<compile_context>
chip_gen: v6e
topology: v6e:2x2x1
jax: 0.10.0
libtpu: 0.0.40
codegen_flags: <defaults>
</compile_context>

<pallas_src>
import functools

import jax
import jax.numpy as jnp
import numpy as np
from jax import lax
from jax.experimental import pallas as pl
from jax.experimental.pallas import tpu as pltpu

_LANES = 128
_SUBLANES = 8
_EPS = 1e-6
_MAX_BLOCK_M = 2048  # 2048x128 f32 tile = 1 MiB; x3 inputs x2 buffers = 6 MiB VMEM


def _cdiv(a, b):
    return -(-a // b)


def _round_up(a, b):
    return _cdiv(a, b) * b


def _prob_loss_kernel(pred_ref, unc_ref, tgt_ref, acc_ref, *,
                      beta, n_valid, block_m, steps_per_split):
    i = pl.program_id(0)   # parallel split (megacore on v7x)
    j = pl.program_id(1)   # reduction step within the split

    @pl.when(j == 0)
    def _():
        acc_ref[...] = jnp.zeros_like(acc_ref)

    # In-kernel cast: free VPU work for a memory-bound kernel.
    p = pred_ref[...].astype(jnp.float32)
    u = unc_ref[...].astype(jnp.float32) + jnp.float32(_EPS)
    t = tgt_ref[...].astype(jnp.float32)

    log_u = jnp.log(u)
    diff = t - p
    # Folded form of 0.5*(log u + diff^2/u) - beta*log u (one fewer mul/sub per elem).
    val = jnp.float32(0.5 - beta) * log_u + jnp.float32(0.5) * (diff * diff) / u

    # Mask everything past the true element count: host (8,128)-granularity padding,
    # partial tail blocks, and any clamped duplicate step contribute exactly zero.
    # NOTE: assumes total element count < 2^31 (int32 flat index).
    step = i * steps_per_split + j                  # unclamped linear step
    row0 = step * block_m
    row_idx = lax.broadcasted_iota(jnp.int32, (block_m, _LANES), 0) + row0
    lane_idx = lax.broadcasted_iota(jnp.int32, (block_m, _LANES), 1)
    flat_idx = row_idx * _LANES + lane_idx
    val = jnp.where(flat_idx < n_valid, val, jnp.float32(0.0))

    # Keep partials vreg-shaped: (block_m,128) -> (block_m/8, 8, 128) sum over the
    # leading axis is pure VPU vreg adds. No per-step XLU scalar reduce.
    acc_ref[...] += val.reshape(block_m // _SUBLANES, _SUBLANES, _LANES).sum(axis=0)


def probabilistic_loss(predictions, uncertainty, targets, beta: float = 0.5):
    """Pallas implementation of ProbabilisticLoss.forward. Returns a scalar f32."""
    assert predictions.shape == uncertainty.shape == targets.shape
    n = int(np.prod(predictions.shape))
    assert n > 0

    # Native dtype all the way to the kernel (halves HBM traffic for bf16 inputs).
    p = predictions.reshape(-1)
    u = uncertainty.reshape(-1)
    t = targets.reshape(-1)

    # Pad only to (8,128) granularity so the slab reshape is legal; the kernel mask
    # makes the pad contribution exactly zero (pad values are irrelevant).
    gran = _SUBLANES * _LANES
    padded = _round_up(n, gran)
    pad = padded - n
    if pad:
        p = jnp.pad(p, (0, pad))
        u = jnp.pad(u, (0, pad))
        t = jnp.pad(t, (0, pad))

    rows = padded // _LANES                      # multiple of 8
    p2 = p.reshape(rows, _LANES)
    u2 = u.reshape(rows, _LANES)
    t2 = t.reshape(rows, _LANES)

    # Row tiling: big blocks amortize per-step overhead; split rows 2-ways on the
    # "parallel" axis so v7x can drive both TensorCores (harmless elsewhere).
    num_splits = 2 if rows >= 2 * _SUBLANES else 1
    block_m = min(_MAX_BLOCK_M, _round_up(_cdiv(rows, num_splits), _SUBLANES))
    steps_total = _cdiv(rows, block_m)
    steps_per_split = _cdiv(steps_total, num_splits)

    def in_map(i, j):
        # Clamp so a possible extra tail step re-reads the last real block instead of
        # issuing a fully out-of-range DMA; its contribution is masked to zero.
        step = i * steps_per_split + j
        return (jnp.minimum(step, steps_total - 1), 0)

    tile_spec = pl.BlockSpec((block_m, _LANES), in_map)

    kernel = functools.partial(
        _prob_loss_kernel,
        beta=float(beta),
        n_valid=n,
        block_m=block_m,
        steps_per_split=steps_per_split,
    )

    bytes_accessed = n * (p2.dtype.itemsize + u2.dtype.itemsize + t2.dtype.itemsize) \
        + num_splits * _SUBLANES * _LANES * 4

    partials = pl.pallas_call(
        kernel,
        out_shape=jax.ShapeDtypeStruct((num_splits * _SUBLANES, _LANES), jnp.float32),
        grid_spec=pltpu.PrefetchScalarGridSpec(
            num_scalar_prefetch=0,
            grid=(num_splits, steps_per_split),
            in_specs=[tile_spec, tile_spec, tile_spec],
            out_specs=pl.BlockSpec((_SUBLANES, _LANES), lambda i, j: (i, 0)),
        ),
        compiler_params=pltpu.CompilerParams(
            dimension_semantics=("parallel", "arbitrary"),
            vmem_limit_bytes=32 * 1024 * 1024,
        ),
        cost_estimate=pl.CostEstimate(
            flops=8 * n, transcendentals=n, bytes_accessed=bytes_accessed),
    )(p2, u2, t2)

    # Tiny final reduce (num_splits * 8 * 128 floats) + mean scaling.
    return jnp.sum(partials) / jnp.float32(n)


def _reference(predictions, uncertainty, targets, beta=0.5):
    u = uncertainty.astype(jnp.float32) + _EPS
    p = predictions.astype(jnp.float32)
    t = targets.astype(jnp.float32)
    nll = 0.5 * (jnp.log(u) + (t - p) ** 2 / u)
    reg = beta * jnp.log(u)
    return jnp.mean(nll - reg)


if __name__ == "__main__":
    key = jax.random.PRNGKey(0)
    k1, k2, k3 = jax.random.split(key, 3)

    # Small shapes consistent with the module: (batch=2, seq=8, hidden=32)
    shape = (2, 8, 32)
    predictions = jax.random.normal(k1, shape, dtype=jnp.float32)
    targets = jax.random.normal(k2, shape, dtype=jnp.float32)
    # variance must be positive
    uncertainty = jax.random.uniform(k3, shape, dtype=jnp.float32, minval=0.05, maxval=1.0)

    loss = jax.block_until_ready(probabilistic_loss(predictions, uncertainty, targets, beta=0.5))
    ref = jax.block_until_ready(_reference(predictions, uncertainty, targets, beta=0.5))

    np.testing.assert_allclose(np.asarray(loss), np.asarray(ref), rtol=1e-5, atol=1e-5)
    print("KERNEL_OK")
</pallas_src>

<mosaic_0001>
module attributes {stable_mosaic.version = 11 : i64} {
  func.func @_prob_loss_kernel(%arg0: i32, %arg1: i32, %arg2: memref<8x128xf32, #tpu.memory_space<vmem>>, %arg3: memref<8x128xf32, #tpu.memory_space<vmem>>, %arg4: memref<8x128xf32, #tpu.memory_space<vmem>>, %arg5: memref<8x128xf32, #tpu.memory_space<vmem>>) attributes {dimension_semantics = [#tpu.dimension_semantics<parallel>, #tpu.dimension_semantics<arbitrary>], iteration_bounds = array<i64: 1, 1>, scalar_prefetch = 0 : i64, scratch_operands = 0 : i64, tpu.core_type = #tpu.core_type<tc>, window_params = [{transform_indices = @transform_0, window_bounds = array<i64: 8, 128>}, {transform_indices = @transform_1, window_bounds = array<i64: 8, 128>}, {transform_indices = @transform_2, window_bounds = array<i64: 8, 128>}, {transform_indices = @transform_3, window_bounds = array<i64: 8, 128>}]} {
    %c0_i32 = arith.constant 0 : i32
    %0 = arith.cmpi eq, %arg1, %c0_i32 : i32
    %1 = arith.extui %0 : i1 to i32
    %c0_i32_0 = arith.constant 0 : i32
    %2 = arith.cmpi ne, %1, %c0_i32_0 : i32
    scf.if %2 {
      %cst_14 = arith.constant 0.000000e+00 : f32
      %36 = vector.broadcast %cst_14 : f32 to vector<8x128xf32>
      %c0_15 = arith.constant 0 : index
      %c0_16 = arith.constant 0 : index
      %37 = vector.load %arg5[%c0_15, %c0_16] : memref<8x128xf32, #tpu.memory_space<vmem>>, vector<8x128xf32>
      tpu.vector_store %arg5[%c0_15, %c0_16], %36 {strides = array<i32>} : memref<8x128xf32, #tpu.memory_space<vmem>>, vector<8x128xf32>,
    } else {
    }
    %c0 = arith.constant 0 : index
    %c0_1 = arith.constant 0 : index
    %3 = vector.load %arg2[%c0, %c0_1] : memref<8x128xf32, #tpu.memory_space<vmem>>, vector<8x128xf32>
    %c0_2 = arith.constant 0 : index
    %c0_3 = arith.constant 0 : index
    %4 = vector.load %arg3[%c0_2, %c0_3] : memref<8x128xf32, #tpu.memory_space<vmem>>, vector<8x128xf32>
    %cst = arith.constant 9.99999997E-7 : f32
    %5 = vector.broadcast %cst : f32 to vector<8x128xf32>
    %6 = arith.addf %4, %5 : vector<8x128xf32>
    %c0_4 = arith.constant 0 : index
    %c0_5 = arith.constant 0 : index
    %7 = vector.load %arg4[%c0_4, %c0_5] : memref<8x128xf32, #tpu.memory_space<vmem>>, vector<8x128xf32>
    %8 = math.log %6 : vector<8x128xf32>
    %9 = arith.subf %7, %3 : vector<8x128xf32>
    %cst_6 = arith.constant 0.000000e+00 : f32
    %10 = vector.broadcast %cst_6 : f32 to vector<8x128xf32>
    %11 = arith.mulf %10, %8 : vector<8x128xf32>
    %12 = arith.mulf %9, %9 : vector<8x128xf32>
    %cst_7 = arith.constant 5.000000e-01 : f32
    %13 = vector.broadcast %cst_7 : f32 to vector<8x128xf32>
    %14 = arith.mulf %13, %12 : vector<8x128xf32>
    %15 = arith.divf %14, %6 : vector<8x128xf32>
    %16 = arith.addf %11, %15 : vector<8x128xf32>
    %c1_i32 = arith.constant 1 : i32
    %17 = arith.muli %arg0, %c1_i32 : i32
    %18 = arith.addi %17, %arg1 : i32
    %c8_i32 = arith.constant 8 : i32
    %19 = arith.muli %18, %c8_i32 : i32
    %20 = tpu.iota {dimensions = array<i32: 0>} : vector<8x128xi32>
    %21 = vector.broadcast %19 : i32 to vector<8x128xi32>
    %22 = arith.addi %20, %21 : vector<8x128xi32>
    %23 = tpu.iota {dimensions = array<i32: 1>} : vector<8x128xi32>
    %c128_i32 = arith.constant 128 : i32
    %24 = vector.broadcast %c128_i32 : i32 to vector<8x128xi32>
    %25 = arith.muli %22, %24 : vector<8x128xi32>
    %26 = arith.addi %25, %23 : vector<8x128xi32>
    %c512_i32 = arith.constant 512 : i32
    %27 = vector.broadcast %c512_i32 : i32 to vector<8x128xi32>
    %28 = arith.cmpi slt, %26, %27 : vector<8x128xi32>
    %cst_8 = arith.constant 0.000000e+00 : f32
    %29 = vector.broadcast %cst_8 : f32 to vector<8x128xf32>
    %30 = arith.select %28, %16, %29 : vector<8x128xi1>, vector<8x128xf32>
    %c0_9 = arith.constant 0 : index
    %c0_10 = arith.constant 0 : index
    %31 = vector.load %arg5[%c0_9, %c0_10] : memref<8x128xf32, #tpu.memory_space<vmem>>, vector<8x128xf32>
    %32 = vector.shape_cast %30 : vector<8x128xf32> to vector<1x8x128xf32>
    %cst_11 = arith.constant dense<0.000000e+00> : vector<8x128xf32>
    %33 = vector.multi_reduction <add>, %32, %cst_11 [0] : vector<1x8x128xf32> to vector<8x128xf32>
    %34 = arith.addf %31, %33 : vector<8x128xf32>
    %c0_12 = arith.constant 0 : index
    %c0_13 = arith.constant 0 : index
    %35 = vector.load %arg5[%c0_12, %c0_13] : memref<8x128xf32, #tpu.memory_space<vmem>>, vector<8x128xf32>
    tpu.vector_store %arg5[%c0_12, %c0_13], %34 {strides = array<i32>} : memref<8x128xf32, #tpu.memory_space<vmem>>, vector<8x128xf32>,
    return
  }
  func.func @transform_0(%arg0: i32, %arg1: i32) -> (i32, i32) {
    %c1_i32 = arith.constant 1 : i32
    %0 = arith.muli %arg0, %c1_i32 : i32
    %1 = arith.addi %0, %arg1 : i32
    %c0_i32 = arith.constant 0 : i32
    %2 = arith.minsi %1, %c0_i32 : i32
    %c0_i32_0 = arith.constant 0 : i32
    %c0_i32_1 = arith.constant 0 : i32
    return %2, %c0_i32_0 : i32, i32
  }
  func.func @transform_1(%arg0: i32, %arg1: i32) -> (i32, i32) {
    %c1_i32 = arith.constant 1 : i32
    %0 = arith.muli %arg0, %c1_i32 : i32
    %1 = arith.addi %0, %arg1 : i32
    %c0_i32 = arith.constant 0 : i32
    %2 = arith.minsi %1, %c0_i32 : i32
    %c0_i32_0 = arith.constant 0 : i32
    %c0_i32_1 = arith.constant 0 : i32
    return %2, %c0_i32_0 : i32, i32
  }
  func.func @transform_2(%arg0: i32, %arg1: i32) -> (i32, i32) {
    %c1_i32 = arith.constant 1 : i32
    %0 = arith.muli %arg0, %c1_i32 : i32
    %1 = arith.addi %0, %arg1 : i32
    %c0_i32 = arith.constant 0 : i32
    %2 = arith.minsi %1, %c0_i32 : i32
    %c0_i32_0 = arith.constant 0 : i32
    %c0_i32_1 = arith.constant 0 : i32
    return %2, %c0_i32_0 : i32, i32
  }
  func.func @transform_3(%arg0: i32, %arg1: i32) -> (i32, i32) {
    %c0_i32 = arith.constant 0 : i32
    %c0_i32_0 = arith.constant 0 : i32
    return %arg0, %c0_i32 : i32, i32
  }
}

</mosaic_0001>

<bundles_post_ra>
// kernel: tpu_custom_call.1
= control target key start
LH: loop header
LB: loop body
LE: loop exit
PB: predicated region body
PF: predicated region fallthrough
CT: control target
= control target key end

     0   :  { %8 = vsyncpa [#allocation3], 0  ;;  %s261_s0 = inlined_call_operand.hbm [shape: f32[8,128], index: 0, kind: input, shape index: {}]   ;;  %s262_s1 = inlined_call_operand.hbm [shape: f32[8,128], index: 1, kind: input, shape index: {}]   ;;  %s263_s2 = inlined_call_operand.hbm [shape: f32[8,128], index: 2, kind: input, shape index: {}]   ;;  %s264_s3 = inlined_call_operand.hbm [shape: f32[8,128], index: 3, kind: output, shape index: {}]  }
   0x1   :  { %9 = vsyncpa [#allocation6], 0 }
   0x2   :  { %10 = vsyncpa [#allocation4], 0  ;;  %s225_s12 = smov [#allocation5]   ;;  %s226_s14 = smov [#allocation2]  }
   0x3   :  { %s37_s13 = sshll.u32 %s225_s12, 4  ;;  %s22_s15 = sshll.u32 %s226_s14, 4  ;;  %s38_s13 = int_to_ptr.vmem [resolvable:$true] %s37_s13  ;;  %s23_s15 = int_to_ptr.vmem [resolvable:$true] %s22_s15 }
   0x4   :  { %s147_s16 = scalar_lea.vmem %s38_s13, 128  ;;  %p152_p1 = scmp.lt.s32.totalorder %s38_s13, %s38_s13 }
   0x5   :  { %p148_p0 = scmp.ne.s32.totalorder %s38_s13, %s147_s16  ;;  %p153_p2 = scmp.lt.s32.totalorder %s147_s16, %s147_s16 }
   0x7   :  { %p154_p3 = por %p153_p2, %p152_p1 }
   0x9   :  { %p155_p4 = pnand %p154_p3, %p148_p0 }
   0xb   :  { %158 = shalt.err (!%p155_p4)
}
   0xc   :  { %40 = dma.hbm_to_vmem [thread:$0]  %s262_s1, 128, %s38_s13, [#allocation6]  }
   0xd   :  { %s167_s19 = scalar_lea.vmem %s23_s15, 128  ;;  %p172_p6 = scmp.lt.s32.totalorder %s23_s15, %s23_s15 }
   0xe   :  { %p168_p5 = scmp.ne.s32.totalorder %s23_s15, %s167_s19  ;;  %p173_p7 = scmp.lt.s32.totalorder %s167_s19, %s167_s19 }
  0x10   :  { %p174_p8 = por %p173_p7, %p172_p6 }
  0x12   :  { %p175_p9 = pnand %p174_p8, %p168_p5 }
  0x14   :  { %178 = shalt.err (!%p175_p9)
}
  0x15   :  { %25 = dma.hbm_to_vmem [thread:$0]  %s261_s0, 128, %s23_s15, [#allocation3]  }
  0x16   :  { %s227_s22 = smov [#allocation7]  }
  0x17   :  { %s52_s23 = sshll.u32 %s227_s22, 4  ;;  %s53_s23 = int_to_ptr.vmem [resolvable:$true] %s52_s23 }
  0x18   :  { %s187_s24 = scalar_lea.vmem %s53_s23, 128  ;;  %p192_p11 = scmp.lt.s32.totalorder %s53_s23, %s53_s23 }
  0x19   :  { %p188_p10 = scmp.ne.s32.totalorder %s53_s23, %s187_s24  ;;  %p193_p12 = scmp.lt.s32.totalorder %s187_s24, %s187_s24 }
  0x1b   :  { %p194_p13 = por %p193_p12, %p192_p11 }
  0x1d   :  { %p195_p0 = pnand %p194_p13, %p188_p10 }
  0x1f   :  { %198 = shalt.err (!%p195_p0)
}
  0x20   :  { %55 = dma.hbm_to_vmem [thread:$0]  %s263_s2, 128, %s53_s23, [#allocation6]  }
  0x21   :  { %219 = dma.done.wait [#allocation3], 128  }
  0x22   :  { %220 = vsyncadd [#allocation3], 4294967168 }
  0x23   :  { %221 = dma.done.wait [#allocation6], 256  }
  0x24   :  { %222 = vsyncadd [#allocation6], 4294967040  ;;  %v80_v0 = vld [vmem:[#allocation5] sm:$0xff]  ;;  %v79_v2 = vld [vmem:[#allocation2] sm:$0xff]  ;;  %v94_v4 = vlaneseq  ;;  %s228_s0 = smov [#allocation8]  }
  0x25   :  { %v81_v1 = vadd.f32 1e-06, %v80_v0  ;;  %v82_v3 = vld [vmem:[#allocation7] sm:$0xff]  ;;  %s114_s2 = sshll.u32 %s228_s0, 4  ;;  %s115_s2 = int_to_ptr.vmem [resolvable:$true] %s114_s2 }
  0x26   :  { %v85_v5 = vsub.f32 %v82_v3, %v79_v2  ;;  %v95_v6 = vshrl.u32 %v94_v4, 7  ;;  %v99_v8 = vand.u32 127, %v94_v4  ;;  %s199_s26 = scalar_lea.vmem %s115_s2, 128  ;;  %p204_p2 = scmp.lt.s32.totalorder %s115_s2, %s115_s2 }
  0x27   :  { %135 = vlog2.f32 %v81_v1  ;;  %p200_p1 = scmp.ne.s32.totalorder %s115_s2, %s199_s26  ;;  %p205_p3 = scmp.lt.s32.totalorder %s199_s26, %s199_s26 }
  0x28   :  { %137 = vrcp.f32 %v81_v1  ;;  %v87_v7 = vmul.f32 %v85_v5, %v85_v5  ;;  %v100_v9 = vmul.u32 128, %v95_v6 }
  0x29   :  { %p206_p4 = por %p205_p3, %p204_p2 }
  0x2a   :  { %v88_v10 = vmul.f32 0.5, %v87_v7  ;;  %v101_v12 = vadd.s32 %v100_v9, %v99_v8 }
  0x2b   :  { %p207_p5 = pnand %p206_p4, %p200_p1 }
  0x2c   :  { %vm102_vm0 = vcmp.lt.s32.totalorder %v101_v12, 512 }
  0x34   :  { %v136_v11 = vpop.eup %135 }
  0x35   :  { %v138_v13 = vpop.eup %137  ;;  %v84_v14 = vmul.f32 0.6931472, %v136_v11 }
  0x36   :  { %v90_v15 = vmul.f32 %v138_v13, %v88_v10 }
  0x37   :  { %v86_v16 = vmul.f32 0.0, %v84_v14 }
  0x39   :  { %v91_v17 = vadd.f32 %v90_v15, %v86_v16 }
  0x3b   :  { %v103_v18 = vsel %vm102_vm0, %v91_v17, 0.0 }
  0x3c   :  { %107 = vst [vmem:[#allocation8] sm:$0xff] %v103_v18 }
  0x3d   :  { %210 = shalt.err (!%p207_p5)
}
  0x3e   :  { %117 = dma.vmem_to_hbm [thread:$0]  %s115_s2, 128, %s264_s3, [#allocation4]  }
  0x3f   :  { %223 = dma.done.wait [#allocation4], 128  }
  0x40   :  { %224 = vsyncadd [#allocation4], 4294967168 }
  0x41   :  { %121 = vsyncpa [#allocation3], 1 }
  0x42   :  { %122 = vsyncpa [#allocation6], 1 }
  0x43   :  { %123 = vsyncpa [#allocation4], 1 }

</bundles_post_ra>
